<compile_context>
chip_gen: v5e
topology: v5e:2x2
jax: 0.10.0
libtpu: 0.0.40
codegen_flags: <defaults>
</compile_context>

<pallas_src>
import functools

import jax
import jax.numpy as jnp
from jax.experimental import pallas as pl
from jax.experimental.pallas import tpu as pltpu

LANE = 128


def _round_up(x, m):
    return (x + m - 1) // m * m


def _pad2(a, rows, cols):
    return jnp.pad(a, ((0, rows - a.shape[0]), (0, cols - a.shape[1])))


def _actor_kernel(repr_dim, feature_dim, tk, nk,
                  obs_ref,
                  w1_ref, b1_ref, ln_g_ref, ln_b_ref,
                  w2_ref, b2_ref, w3_ref, b3_ref, w4_ref, b4_ref,
                  mu_ref, acc_ref):
    k = pl.program_id(1)
    F = acc_ref.shape[1]

    # ---- trunk Linear: accumulate one K chunk into the f32 scratch ---------
    x = obs_ref[...]
    if repr_dim % tk != 0:
        # Lanes of the last K chunk past the real obs columns hold undefined
        # data (edge block) -> zero them so they contribute nothing.
        col = jax.lax.broadcasted_iota(jnp.int32, x.shape, 1)
        x = jnp.where(col < repr_dim - k * tk, x, 0.0)
    x = x.astype(jnp.bfloat16)

    k_start = pl.multiple_of(k * tk, 128)
    w1_blk = w1_ref[pl.ds(k_start, tk), :]          # w1 resident; slice K chunk
    part = jnp.dot(x, w1_blk, preferred_element_type=jnp.float32)

    if nk == 1:
        acc_ref[...] = part
    else:
        @pl.when(k == 0)
        def _init():
            acc_ref[...] = jnp.zeros_like(acc_ref)
        acc_ref[...] += part

    # ---- last K chunk: LayerNorm -> Tanh -> policy MLP -> tanh -> store ----
    @pl.when(k == nk - 1)
    def _finish():
        inv_f = jnp.float32(1.0 / feature_dim)
        h = acc_ref[...] + b1_ref[...]              # padded feature lanes stay 0
        mean = jnp.sum(h, axis=-1, keepdims=True) * inv_f
        hc = h - mean
        if feature_dim != F:
            colf = jax.lax.broadcasted_iota(jnp.int32, hc.shape, 1)
            hc = jnp.where(colf < feature_dim, hc, 0.0)   # keep padded lanes out of var
        var = jnp.sum(hc * hc, axis=-1, keepdims=True) * inv_f
        h = hc * jax.lax.rsqrt(var + 1e-5)          # eps matches nn.LayerNorm
        h = h * ln_g_ref[...] + ln_b_ref[...]       # padded gamma/beta are 0
        h = jnp.tanh(h).astype(jnp.bfloat16)

        h = jnp.dot(h, w2_ref[...], preferred_element_type=jnp.float32) + b2_ref[...]
        h = jnp.maximum(h, 0.0).astype(jnp.bfloat16)
        h = jnp.dot(h, w3_ref[...], preferred_element_type=jnp.float32) + b3_ref[...]
        h = jnp.maximum(h, 0.0).astype(jnp.bfloat16)
        mu = jnp.dot(h, w4_ref[...], preferred_element_type=jnp.float32) + b4_ref[...]
        mu_ref[...] = jnp.tanh(mu).astype(mu_ref.dtype)


def prepare_params(params, *, k_tile=2048):
    """Pad feature axes to 128-lane multiples, pad the trunk K dim to the K
    tile, and cast matmul weights to bf16 (biases / LayerNorm affine stay f32).
    Done once, off the hot path."""
    repr_dim, feature_dim = params["w1"].shape
    hidden_dim = params["w2"].shape[1]
    action_dim = params["w4"].shape[1]

    F = _round_up(feature_dim, LANE)
    H = _round_up(hidden_dim, LANE)
    A = _round_up(action_dim, LANE)
    tk = min(_round_up(repr_dim, LANE), _round_up(k_tile, LANE))
    K = _round_up(repr_dim, tk)          # every in-kernel K slice stays in bounds

    def w(name, r, c):
        return _pad2(params[name], r, c).astype(jnp.bfloat16)

    def v(name, c):
        return _pad2(params[name], 1, c).astype(jnp.float32)

    return {
        "dims": (repr_dim, feature_dim, hidden_dim, action_dim, K, F, H, A, tk),
        "w1": w("w1", K, F), "b1": v("b1", F),
        "ln_g": v("ln_g", F), "ln_b": v("ln_b", F),
        "w2": w("w2", F, H), "b2": v("b2", H),
        "w3": w("w3", H, H), "b3": v("b3", H),
        "w4": w("w4", H, A), "b4": v("b4", A),
    }


def _vmem_capacity_bytes():
    try:
        return int(pltpu.get_tpu_info().vmem_capacity_bytes)
    except Exception:
        return 64 << 20   # conservative fallback: v7x per-TensorCore VMEM


def actor_forward(obs, std_scalar, prepped, *, batch_tile=256):
    """Returns (mu, std) — the parameters of utils.TruncatedNormal(mu, std)."""
    repr_dim, feature_dim, hidden_dim, action_dim, K, F, H, A, tk = prepped["dims"]
    B = obs.shape[0]
    nk = K // tk

    # Batch tile: multiple of 16 (bf16 row packing).  Small batches split into
    # >= 2 grid steps so both v7x TensorCores get work.
    batch_tile = max(16, _round_up(batch_tile, 16))
    if B >= batch_tile:
        TB = batch_tile
    elif B > 16:
        TB = _round_up(pl.cdiv(B, 2), 16)
    else:
        TB = 16
    nb = pl.cdiv(B, TB)
    grid = (nb, nk)

    def resident(shape):
        # Block index never changes -> one DMA at start, one VMEM buffer.
        return pl.BlockSpec(shape, lambda i, k: (0, 0),
                            pipeline_mode=pl.Buffered(1))

    in_specs = [
        pl.BlockSpec((TB, tk), lambda i, k: (i, k)),       # obs K chunk (pipelined)
        resident((K, F)), resident((1, F)), resident((1, F)), resident((1, F)),
        resident((F, H)), resident((1, H)),
        resident((H, H)), resident((1, H)),
        resident((H, A)), resident((1, A)),
    ]
    out_specs = pl.BlockSpec((TB, A), lambda i, k: (i, 0))

    # VMEM budget: single-buffered weights + double-buffered obs/mu tiles +
    # the f32 trunk accumulator + slack, clamped to 75% of this generation's
    # physical VMEM (v5e/v6e 128 MiB, v7x 64 MiB).
    weight_bytes = sum(int(a.size) * a.dtype.itemsize
                       for name, a in prepped.items() if name != "dims")
    stream_bytes = 2 * TB * tk * obs.dtype.itemsize + 2 * TB * A * 2 + TB * F * 4
    need = weight_bytes + stream_bytes + (8 << 20)
    vmem_limit = int(min(max(need, 16 << 20), (_vmem_capacity_bytes() * 3) // 4))

    kernel = functools.partial(_actor_kernel, repr_dim, feature_dim, tk, nk)

    mu_pad = pl.pallas_call(
        kernel,
        out_shape=jax.ShapeDtypeStruct((B, A), jnp.bfloat16),
        grid=grid,
        in_specs=in_specs,
        out_specs=out_specs,
        scratch_shapes=[pltpu.VMEM((TB, F), jnp.float32)],
        compiler_params=pltpu.CompilerParams(
            dimension_semantics=("parallel", "arbitrary"),
            vmem_limit_bytes=vmem_limit),
    )(obs,
      prepped["w1"], prepped["b1"], prepped["ln_g"], prepped["ln_b"],
      prepped["w2"], prepped["b2"], prepped["w3"], prepped["b3"],
      prepped["w4"], prepped["b4"])

    mu = mu_pad[:, :action_dim].astype(jnp.float32)
    std = jnp.full((B, action_dim), std_scalar, dtype=mu.dtype)
    return mu, std


def init_params(key, repr_dim, feature_dim, hidden_dim, action_dim):
    ks = jax.random.split(key, 8)

    def lin(kw, kb, fan_in, fan_out):
        w = jax.random.normal(kw, (fan_in, fan_out), jnp.float32) / jnp.sqrt(fan_in)
        b = jax.random.normal(kb, (1, fan_out), jnp.float32) * 0.01
        return w, b

    w1, b1 = lin(ks[0], ks[1], repr_dim, feature_dim)
    w2, b2 = lin(ks[2], ks[3], feature_dim, hidden_dim)
    w3, b3 = lin(ks[4], ks[5], hidden_dim, hidden_dim)
    w4, b4 = lin(ks[6], ks[7], hidden_dim, action_dim)
    return {
        "w1": w1, "b1": b1,
        "ln_g": jnp.ones((1, feature_dim), jnp.float32),
        "ln_b": jnp.zeros((1, feature_dim), jnp.float32),
        "w2": w2, "b2": b2,
        "w3": w3, "b3": b3,
        "w4": w4, "b4": b4,
    }


def _reference(obs, std_scalar, p):
    # Mirrors the kernel's bf16-matmul / f32-accumulate numerics.
    def mm(x, w):
        return jnp.dot(x.astype(jnp.bfloat16), w.astype(jnp.bfloat16),
                       preferred_element_type=jnp.float32)

    h = mm(obs, p["w1"]) + p["b1"]
    mean = jnp.mean(h, axis=-1, keepdims=True)
    hc = h - mean
    var = jnp.mean(hc * hc, axis=-1, keepdims=True)
    h = hc * jax.lax.rsqrt(var + 1e-5) * p["ln_g"] + p["ln_b"]
    h = jnp.tanh(h)
    h = jnp.maximum(mm(h, p["w2"]) + p["b2"], 0.0)
    h = jnp.maximum(mm(h, p["w3"]) + p["b3"], 0.0)
    mu = jnp.tanh(mm(h, p["w4"]) + p["b4"])
    return mu, jnp.full_like(mu, std_scalar)


if __name__ == "__main__":
    # Small shapes chosen to exercise every code path: K streamed over 3 chunks
    # with a ragged tail (repr_dim=320, k_tile=128), padded feature / hidden /
    # action lanes, and a ragged 2-step batch grid (B=20 -> TB=16).
    B, repr_dim, feature_dim, hidden_dim = 20, 320, 48, 32
    action_dim = 4
    std_scalar = 0.2

    key = jax.random.PRNGKey(0)
    k_obs, k_params = jax.random.split(key)
    obs = jax.random.normal(k_obs, (B, repr_dim), jnp.float32)
    params = init_params(k_params, repr_dim, feature_dim, hidden_dim, action_dim)
    prepped = prepare_params(params, k_tile=128)

    mu, std = actor_forward(obs, std_scalar, prepped, batch_tile=256)
    jax.block_until_ready((mu, std))

    mu_ref, std_ref = _reference(obs, std_scalar, params)
    assert mu.shape == (B, action_dim) and std.shape == (B, action_dim)
    # mu is written back in bf16 (lane-dense store) -> allow ~1 bf16 ulp slack.
    assert jnp.allclose(mu, mu_ref, atol=5e-3, rtol=5e-3), \
        float(jnp.max(jnp.abs(mu - mu_ref)))
    assert jnp.allclose(std, std_ref, atol=1e-6)

    print("KERNEL_OK")
</pallas_src>

<mosaic_0001>
module attributes {stable_mosaic.version = 11 : i64} {
  func.func @_actor_kernel(%arg0: i32, %arg1: i32, %arg2: memref<16x128xf32, #tpu.memory_space<vmem>>, %arg3: memref<384x128xbf16, #tpu.memory_space<vmem>>, %arg4: memref<1x128xf32, #tpu.memory_space<vmem>>, %arg5: memref<1x128xf32, #tpu.memory_space<vmem>>, %arg6: memref<1x128xf32, #tpu.memory_space<vmem>>, %arg7: memref<128x128xbf16, #tpu.memory_space<vmem>>, %arg8: memref<1x128xf32, #tpu.memory_space<vmem>>, %arg9: memref<128x128xbf16, #tpu.memory_space<vmem>>, %arg10: memref<1x128xf32, #tpu.memory_space<vmem>>, %arg11: memref<128x128xbf16, #tpu.memory_space<vmem>>, %arg12: memref<1x128xf32, #tpu.memory_space<vmem>>, %arg13: memref<16x128xbf16, #tpu.memory_space<vmem>>, %arg14: memref<16x128xf32, #tpu.memory_space<vmem>>) attributes {dimension_semantics = [#tpu.dimension_semantics<parallel>, #tpu.dimension_semantics<arbitrary>], iteration_bounds = array<i64: 2, 3>, scalar_prefetch = 0 : i64, scratch_operands = 1 : i64, tpu.core_type = #tpu.core_type<tc>, window_params = [{transform_indices = @transform_0, window_bounds = array<i64: 16, 128>}, {pipeline_mode = #tpu.pipeline_mode<synchronous>, transform_indices = @transform_1, window_bounds = array<i64: 384, 128>}, {pipeline_mode = #tpu.pipeline_mode<synchronous>, transform_indices = @transform_2, window_bounds = array<i64: 1, 128>}, {pipeline_mode = #tpu.pipeline_mode<synchronous>, transform_indices = @transform_3, window_bounds = array<i64: 1, 128>}, {pipeline_mode = #tpu.pipeline_mode<synchronous>, transform_indices = @transform_4, window_bounds = array<i64: 1, 128>}, {pipeline_mode = #tpu.pipeline_mode<synchronous>, transform_indices = @transform_5, window_bounds = array<i64: 128, 128>}, {pipeline_mode = #tpu.pipeline_mode<synchronous>, transform_indices = @transform_6, window_bounds = array<i64: 1, 128>}, {pipeline_mode = #tpu.pipeline_mode<synchronous>, transform_indices = @transform_7, window_bounds = array<i64: 128, 128>}, {pipeline_mode = #tpu.pipeline_mode<synchronous>, transform_indices = @transform_8, window_bounds = array<i64: 1, 128>}, {pipeline_mode = #tpu.pipeline_mode<synchronous>, transform_indices = @transform_9, window_bounds = array<i64: 128, 128>}, {pipeline_mode = #tpu.pipeline_mode<synchronous>, transform_indices = @transform_10, window_bounds = array<i64: 1, 128>}, {transform_indices = @transform_11, window_bounds = array<i64: 16, 128>}]} {
    %c0 = arith.constant 0 : index
    %c0_0 = arith.constant 0 : index
    %0 = vector.load %arg2[%c0, %c0_0] : memref<16x128xf32, #tpu.memory_space<vmem>>, vector<16x128xf32>
    %1 = tpu.iota {dimensions = array<i32: 1>} : vector<16x128xi32>
    %c128_i32 = arith.constant 128 : i32
    %2 = arith.muli %arg1, %c128_i32 : i32
    %c320_i32 = arith.constant 320 : i32
    %3 = arith.subi %c320_i32, %2 : i32
    %4 = vector.broadcast %3 : i32 to vector<16x128xi32>
    %5 = arith.cmpi slt, %1, %4 : vector<16x128xi32>
    %cst = arith.constant 0.000000e+00 : f32
    %6 = vector.broadcast %cst : f32 to vector<16x128xf32>
    %7 = arith.select %5, %0, %6 : vector<16x128xi1>, vector<16x128xf32>
    %8 = arith.truncf %7 : vector<16x128xf32> to vector<16x128xbf16>
    %c128_i32_1 = arith.constant 128 : i32
    %9 = arith.muli %arg1, %c128_i32_1 : i32
    %10 = tpu.assume_multiple %9, 128 : i32
    %11 = arith.index_cast %10 : i32 to index
    %c0_2 = arith.constant 0 : index
    %12 = vector.load %arg3[%11, %c0_2] : memref<384x128xbf16, #tpu.memory_space<vmem>>, vector<128x128xbf16>
    %cst_3 = arith.constant dense<0.000000e+00> : vector<16x128xf32>
    %13 = tpu.matmul %8, %12, %cst_3 {dimension_numbers = #tpu.dot_dimension_numbers<[1], [0], [0], [1], [0, 0, 1, 1], [], []>} : vector<16x128xbf16>, vector<128x128xbf16>, vector<16x128xf32> -> vector<16x128xf32>
    %c0_i32 = arith.constant 0 : i32
    %14 = arith.cmpi eq, %arg1, %c0_i32 : i32
    %15 = arith.extui %14 : i1 to i32
    %c0_i32_4 = arith.constant 0 : i32
    %16 = arith.cmpi ne, %15, %c0_i32_4 : i32
    scf.if %16 {
      %cst_10 = arith.constant 0.000000e+00 : f32
      %23 = vector.broadcast %cst_10 : f32 to vector<16x128xf32>
      %c0_11 = arith.constant 0 : index
      %c0_12 = arith.constant 0 : index
      %24 = vector.load %arg14[%c0_11, %c0_12] : memref<16x128xf32, #tpu.memory_space<vmem>>, vector<16x128xf32>
      tpu.vector_store %arg14[%c0_11, %c0_12], %23 {strides = array<i32>} : memref<16x128xf32, #tpu.memory_space<vmem>>, vector<16x128xf32>,
    } else {
    }
    %c0_5 = arith.constant 0 : index
    %c0_6 = arith.constant 0 : index
    %17 = vector.load %arg14[%c0_5, %c0_6] : memref<16x128xf32, #tpu.memory_space<vmem>>, vector<16x128xf32>
    %18 = arith.addf %17, %13 : vector<16x128xf32>
    %c0_7 = arith.constant 0 : index
    %c0_8 = arith.constant 0 : index
    %19 = vector.load %arg14[%c0_7, %c0_8] : memref<16x128xf32, #tpu.memory_space<vmem>>, vector<16x128xf32>
    tpu.vector_store %arg14[%c0_7, %c0_8], %18 {strides = array<i32>} : memref<16x128xf32, #tpu.memory_space<vmem>>, vector<16x128xf32>,
    %c2_i32 = arith.constant 2 : i32
    %20 = arith.cmpi eq, %arg1, %c2_i32 : i32
    %21 = arith.extui %20 : i1 to i32
    %c0_i32_9 = arith.constant 0 : i32
    %22 = arith.cmpi ne, %21, %c0_i32_9 : i32
    scf.if %22 {
      %c0_10 = arith.constant 0 : index
      %c0_11 = arith.constant 0 : index
      %23 = vector.load %arg14[%c0_10, %c0_11] : memref<16x128xf32, #tpu.memory_space<vmem>>, vector<16x128xf32>
      %c0_12 = arith.constant 0 : index
      %c0_13 = arith.constant 0 : index
      %24 = vector.load %arg4[%c0_12, %c0_13] : memref<1x128xf32, #tpu.memory_space<vmem>>, vector<1x128xf32>
      %25 = vector.broadcast %24 : vector<1x128xf32> to vector<16x128xf32>
      %26 = arith.addf %23, %25 : vector<16x128xf32>
      %cst_14 = arith.constant dense<0.000000e+00> : vector<16xf32>
      %27 = vector.multi_reduction <add>, %26, %cst_14 [1] : vector<16x128xf32> to vector<16xf32>
      %28 = vector.shape_cast %27 : vector<16xf32> to vector<16x1xf32>
      %cst_15 = arith.constant 0.020833334 : f32
      %29 = vector.broadcast %cst_15 : f32 to vector<16x1xf32>
      %30 = arith.mulf %28, %29 : vector<16x1xf32>
      %31 = vector.broadcast %30 : vector<16x1xf32> to vector<16x128xf32>
      %32 = arith.subf %26, %31 : vector<16x128xf32>
      %33 = tpu.iota {dimensions = array<i32: 1>} : vector<16x128xi32>
      %c48_i32 = arith.constant 48 : i32
      %34 = vector.broadcast %c48_i32 : i32 to vector<16x128xi32>
      %35 = arith.cmpi slt, %33, %34 : vector<16x128xi32>
      %cst_16 = arith.constant 0.000000e+00 : f32
      %36 = vector.broadcast %cst_16 : f32 to vector<16x128xf32>
      %37 = arith.select %35, %32, %36 : vector<16x128xi1>, vector<16x128xf32>
      %38 = arith.mulf %37, %37 : vector<16x128xf32>
      %cst_17 = arith.constant dense<0.000000e+00> : vector<16xf32>
      %39 = vector.multi_reduction <add>, %38, %cst_17 [1] : vector<16x128xf32> to vector<16xf32>
      %40 = vector.shape_cast %39 : vector<16xf32> to vector<16x1xf32>
      %cst_18 = arith.constant 0.020833334 : f32
      %41 = vector.broadcast %cst_18 : f32 to vector<16x1xf32>
      %42 = arith.mulf %40, %41 : vector<16x1xf32>
      %cst_19 = arith.constant 9.99999974E-6 : f32
      %43 = vector.broadcast %cst_19 : f32 to vector<16x1xf32>
      %44 = arith.addf %42, %43 : vector<16x1xf32>
      %45 = math.rsqrt %44 : vector<16x1xf32>
      %46 = vector.broadcast %45 : vector<16x1xf32> to vector<16x128xf32>
      %47 = arith.mulf %37, %46 : vector<16x128xf32>
      %c0_20 = arith.constant 0 : index
      %c0_21 = arith.constant 0 : index
      %48 = vector.load %arg5[%c0_20, %c0_21] : memref<1x128xf32, #tpu.memory_space<vmem>>, vector<1x128xf32>
      %49 = vector.broadcast %48 : vector<1x128xf32> to vector<16x128xf32>
      %50 = arith.mulf %47, %49 : vector<16x128xf32>
      %c0_22 = arith.constant 0 : index
      %c0_23 = arith.constant 0 : index
      %51 = vector.load %arg6[%c0_22, %c0_23] : memref<1x128xf32, #tpu.memory_space<vmem>>, vector<1x128xf32>
      %52 = vector.broadcast %51 : vector<1x128xf32> to vector<16x128xf32>
      %53 = arith.addf %50, %52 : vector<16x128xf32>
      %54 = math.tanh %53 : vector<16x128xf32>
      %55 = arith.truncf %54 : vector<16x128xf32> to vector<16x128xbf16>
      %c0_24 = arith.constant 0 : index
      %c0_25 = arith.constant 0 : index
      %56 = vector.load %arg7[%c0_24, %c0_25] : memref<128x128xbf16, #tpu.memory_space<vmem>>, vector<128x128xbf16>
      %cst_26 = arith.constant dense<0.000000e+00> : vector<16x128xf32>
      %57 = tpu.matmul %55, %56, %cst_26 {dimension_numbers = #tpu.dot_dimension_numbers<[1], [0], [0], [1], [0, 0, 1, 1], [], []>} : vector<16x128xbf16>, vector<128x128xbf16>, vector<16x128xf32> -> vector<16x128xf32>
      %c0_27 = arith.constant 0 : index
      %c0_28 = arith.constant 0 : index
      %58 = vector.load %arg8[%c0_27, %c0_28] : memref<1x128xf32, #tpu.memory_space<vmem>>, vector<1x128xf32>
      %59 = vector.broadcast %58 : vector<1x128xf32> to vector<16x128xf32>
      %60 = arith.addf %57, %59 : vector<16x128xf32>
      %cst_29 = arith.constant 0.000000e+00 : f32
      %61 = vector.broadcast %cst_29 : f32 to vector<16x128xf32>
      %62 = arith.maximumf %60, %61 : vector<16x128xf32>
      %63 = arith.truncf %62 : vector<16x128xf32> to vector<16x128xbf16>
      %c0_30 = arith.constant 0 : index
      %c0_31 = arith.constant 0 : index
      %64 = vector.load %arg9[%c0_30, %c0_31] : memref<128x128xbf16, #tpu.memory_space<vmem>>, vector<128x128xbf16>
      %cst_32 = arith.constant dense<0.000000e+00> : vector<16x128xf32>
      %65 = tpu.matmul %63, %64, %cst_32 {dimension_numbers = #tpu.dot_dimension_numbers<[1], [0], [0], [1], [0, 0, 1, 1], [], []>} : vector<16x128xbf16>, vector<128x128xbf16>, vector<16x128xf32> -> vector<16x128xf32>
      %c0_33 = arith.constant 0 : index
      %c0_34 = arith.constant 0 : index
      %66 = vector.load %arg10[%c0_33, %c0_34] : memref<1x128xf32, #tpu.memory_space<vmem>>, vector<1x128xf32>
      %67 = vector.broadcast %66 : vector<1x128xf32> to vector<16x128xf32>
      %68 = arith.addf %65, %67 : vector<16x128xf32>
      %cst_35 = arith.constant 0.000000e+00 : f32
      %69 = vector.broadcast %cst_35 : f32 to vector<16x128xf32>
      %70 = arith.maximumf %68, %69 : vector<16x128xf32>
      %71 = arith.truncf %70 : vector<16x128xf32> to vector<16x128xbf16>
      %c0_36 = arith.constant 0 : index
      %c0_37 = arith.constant 0 : index
      %72 = vector.load %arg11[%c0_36, %c0_37] : memref<128x128xbf16, #tpu.memory_space<vmem>>, vector<128x128xbf16>
      %cst_38 = arith.constant dense<0.000000e+00> : vector<16x128xf32>
      %73 = tpu.matmul %71, %72, %cst_38 {dimension_numbers = #tpu.dot_dimension_numbers<[1], [0], [0], [1], [0, 0, 1, 1], [], []>} : vector<16x128xbf16>, vector<128x128xbf16>, vector<16x128xf32> -> vector<16x128xf32>
      %c0_39 = arith.constant 0 : index
      %c0_40 = arith.constant 0 : index
      %74 = vector.load %arg12[%c0_39, %c0_40] : memref<1x128xf32, #tpu.memory_space<vmem>>, vector<1x128xf32>
      %75 = vector.broadcast %74 : vector<1x128xf32> to vector<16x128xf32>
      %76 = arith.addf %73, %75 : vector<16x128xf32>
      %77 = math.tanh %76 : vector<16x128xf32>
      %78 = arith.truncf %77 : vector<16x128xf32> to vector<16x128xbf16>
      %c0_41 = arith.constant 0 : index
      %c0_42 = arith.constant 0 : index
      %79 = vector.load %arg13[%c0_41, %c0_42] : memref<16x128xbf16, #tpu.memory_space<vmem>>, vector<16x128xbf16>
      tpu.vector_store %arg13[%c0_41, %c0_42], %78 {strides = array<i32>} : memref<16x128xbf16, #tpu.memory_space<vmem>>, vector<16x128xbf16>,
    } else {
    }
    return
  }
  func.func @transform_0(%arg0: i32, %arg1: i32) -> (i32, i32) {
    %c0_i32 = arith.constant 0 : i32
    return %arg0, %arg1 : i32, i32
  }
  func.func @transform_1(%arg0: i32, %arg1: i32) -> (i32, i32) {
    %c0_i32 = arith.constant 0 : i32
    %c0_i32_0 = arith.constant 0 : i32
    %c0_i32_1 = arith.constant 0 : i32
    return %c0_i32, %c0_i32_0 : i32, i32
  }
  func.func @transform_2(%arg0: i32, %arg1: i32) -> (i32, i32) {
    %c0_i32 = arith.constant 0 : i32
    %c0_i32_0 = arith.constant 0 : i32
    %c0_i32_1 = arith.constant 0 : i32
    return %c0_i32, %c0_i32_0 : i32, i32
  }
  func.func @transform_3(%arg0: i32, %arg1: i32) -> (i32, i32) {
    %c0_i32 = arith.constant 0 : i32
    %c0_i32_0 = arith.constant 0 : i32
    %c0_i32_1 = arith.constant 0 : i32
    return %c0_i32, %c0_i32_0 : i32, i32
  }
  func.func @transform_4(%arg0: i32, %arg1: i32) -> (i32, i32) {
    %c0_i32 = arith.constant 0 : i32
    %c0_i32_0 = arith.constant 0 : i32
    %c0_i32_1 = arith.constant 0 : i32
    return %c0_i32, %c0_i32_0 : i32, i32
  }
  func.func @transform_5(%arg0: i32, %arg1: i32) -> (i32, i32) {
    %c0_i32 = arith.constant 0 : i32
    %c0_i32_0 = arith.constant 0 : i32
    %c0_i32_1 = arith.constant 0 : i32
    return %c0_i32, %c0_i32_0 : i32, i32
  }
  func.func @transform_6(%arg0: i32, %arg1: i32) -> (i32, i32) {
    %c0_i32 = arith.constant 0 : i32
    %c0_i32_0 = arith.constant 0 : i32
    %c0_i32_1 = arith.constant 0 : i32
    return %c0_i32, %c0_i32_0 : i32, i32
  }
  func.func @transform_7(%arg0: i32, %arg1: i32) -> (i32, i32) {
    %c0_i32 = arith.constant 0 : i32
    %c0_i32_0 = arith.constant 0 : i32
    %c0_i32_1 = arith.constant 0 : i32
    return %c0_i32, %c0_i32_0 : i32, i32
  }
  func.func @transform_8(%arg0: i32, %arg1: i32) -> (i32, i32) {
    %c0_i32 = arith.constant 0 : i32
    %c0_i32_0 = arith.constant 0 : i32
    %c0_i32_1 = arith.constant 0 : i32
    return %c0_i32, %c0_i32_0 : i32, i32
  }
  func.func @transform_9(%arg0: i32, %arg1: i32) -> (i32, i32) {
    %c0_i32 = arith.constant 0 : i32
    %c0_i32_0 = arith.constant 0 : i32
    %c0_i32_1 = arith.constant 0 : i32
    return %c0_i32, %c0_i32_0 : i32, i32
  }
  func.func @transform_10(%arg0: i32, %arg1: i32) -> (i32, i32) {
    %c0_i32 = arith.constant 0 : i32
    %c0_i32_0 = arith.constant 0 : i32
    %c0_i32_1 = arith.constant 0 : i32
    return %c0_i32, %c0_i32_0 : i32, i32
  }
  func.func @transform_11(%arg0: i32, %arg1: i32) -> (i32, i32) {
    %c0_i32 = arith.constant 0 : i32
    %c0_i32_0 = arith.constant 0 : i32
    return %arg0, %c0_i32 : i32, i32
  }
}

</mosaic_0001>

<bundles_post_ra>
// kernel: tpu_custom_call.1
= control target key start
LH: loop header
LB: loop body
LE: loop exit
PB: predicated region body
PF: predicated region fallthrough
CT: control target
= control target key end

     0   :  { %s2154_s0 = inlined_call_operand.hbm [shape: f32[20,320], index: 0, kind: input, shape index: {}]   ;;  %s2155_s1 = inlined_call_operand.hbm [shape: bf16[384,128], index: 1, kind: input, shape index: {}]   ;;  %s2156_s2 = inlined_call_operand.vmem [shape: f32[1,128], index: 2, kind: input, shape index: {}]   ;;  %s2157_s3 = inlined_call_operand.vmem [shape: f32[1,128], index: 3, kind: input, shape index: {}]   ;;  %s2158_s4 = inlined_call_operand.vmem [shape: f32[1,128], index: 4, kind: input, shape index: {}]   ;;  %s2159_s5 = inlined_call_operand.hbm [shape: bf16[128,128], index: 5, kind: input, shape index: {}]   ;;  %s2160_s6 = inlined_call_operand.vmem [shape: f32[1,128], index: 6, kind: input, shape index: {}]   ;;  %s2161_s7 = inlined_call_operand.hbm [shape: bf16[128,128], index: 7, kind: input, shape index: {}]   ;;  %s2162_s8 = inlined_call_operand.vmem [shape: f32[1,128], index: 8, kind: input, shape index: {}]   ;;  %s2163_s9 = inlined_call_operand.hbm [shape: bf16[128,128], index: 9, kind: input, shape index: {}]   ;;  %s2164_s10 = inlined_call_operand.vmem [shape: f32[1,128], index: 10, kind: input, shape index: {}]   ;;  %s2165_s11 = inlined_call_operand.hbm [shape: bf16[20,128], index: 11, kind: output, shape index: {}]  }
   0x1   :  { %2174 = sst [smem:[#allocation26_spill]] %s2155_s1 }
   0x2   :  { %2175 = sst [smem:[#allocation27_spill]] %s2157_s3 }
   0x3   :  { %2176 = sst [smem:[#allocation28_spill]] %s2158_s4 }
   0x4   :  { %2177 = sst [smem:[#allocation29_spill]] %s2160_s6 }
   0x5   :  { %2178 = sst [smem:[#allocation30_spill]] %s2161_s7 }
   0x6   :  { %2179 = sst [smem:[#allocation31_spill]] %s2162_s8 }
   0x7   :  { %2180 = sst [smem:[#allocation32_spill]] %s2164_s10 }
   0x8   :  { %2181 = sst [smem:[#allocation33_spill]] %s2165_s11 }
   0x9   :  { %16 = vsyncpa [#allocation4], 0 }
   0xa   :  { %18 = vsyncpa [#allocation4 + $0x1], 0 }
   0xb   :  { %19 = vsyncpa [#allocation7], 0 }
   0xc   :  { %20 = vsyncpa [#allocation10], 0 }
   0xd   :  { %21 = vsyncpa [#allocation5], 0 }
   0xe   :  { %23 = vsyncpa [#allocation5 + $0x1], 0  ;;  %s1832_s17 = smov 0   ;;  %s1834_s18 = smov 0  }
   0xf   :  { %s1836_s19 = smov 0   ;;  %s1838_s20 = smov 0  }
  0x10   :  { %s1840_s21 = smov 0   ;;  %s1842_s22 = smov 0  }
  0x11   :  { %s1844_s23 = smov 0   ;;  %s1846_s24 = smov 0  }
  0x12   :  { %s1848_s25 = smov 0   ;;  %s1850_s26 = smov 0  }
  0x13   :  { %s1852_s27 = smov 0  }
  0x14 LB: > { %2182 = sst [smem:[#allocation17_spill]] %s1716_s17  ;;  %s1088_s28 = sadd.s32 4294967295, %s1756_s27   ;;  %s1756_s27 = sphi %s1852_s27, %s29_s27   ;;  %s1752_s26 = sphi %s1850_s26, %s2226_s26   ;;  %s1748_s25 = sphi %s1848_s25, %s2225_s25   ;;  %s1744_s24 = sphi %s1846_s24, %s2224_s24   ;;  %s1740_s23 = sphi %s1844_s23, %s2223_s23   ;;  %s1736_s22 = sphi %s1842_s22, %s2222_s22   ;;  %s1732_s21 = sphi %s1840_s21, %s2221_s21   ;;  %s1728_s20 = sphi %s1838_s20, %s2220_s20   ;;  %s1724_s19 = sphi %s1836_s19, %s2214_s19   ;;  %s1720_s18 = sphi %s1834_s18, %s2219_s18   ;;  %s1716_s17 = sphi %s1832_s17, %s2218_s17  }
  0x15   : > { %2183 = sst [smem:[#allocation18_spill]] %s1724_s19  ;;  %s1089_s29 = sadd.s32 4294967294, %s1756_s27  }
  0x16   : > { %2184 = sst [smem:[#allocation19_spill]] %s1744_s24  ;;  %s38_s30 = sadd.s32 1, %s1748_s25 }
  0x17   : > { %s41_s12 = sadd.s32 1, %s1752_s26  ;;  %p39_p0 = scmp.ge.s32.totalorder %s38_s30, 3 }
  0x18   : > { %s50_s13 = sadd.s32 1, %s1736_s22  ;;  %p57_p1 = scmp.ne.s32.totalorder %s1736_s22, %s1732_s21 }
  0x19   : > { %p58_p2 = scmp.eq.s32.totalorder %s1756_s27, 0  ;;  %s2228_s30 = smov (%p39_p0, %s38_s30), 0 }
  0x1a   : > { %2185 = sst [smem:[#allocation20_spill]] %s2228_s30  ;;  %s2230_s12 = smov (!%p39_p0, %s41_s12), %s1752_s26 }
  0x1b   : > { %s46_s14 = ssub.s32 %s1748_s25, %s2228_s30  ;;  %p1898_p3 = por %p58_p2, %p57_p1 }
  0x1c   : > { %p43_p4 = scmp.ge.s32.totalorder %s2230_s12, 2  ;;  %p63_p5 = scmp.ne.s32.totalorder %s1732_s21, %s1728_s20 }
  0x1d   : > { %p1903_p6 = scmp.eq.s32.totalorder %s1088_s28, 0  ;;  %s286_s11 = sadd.s32 1, %s1724_s19 }
  0x1e   : > { %s2232_s12 = smov (%p43_p4, %s2230_s12), 0  ;;  %p296_p8 = scmp.ne.s32.totalorder %s1724_s19, %s1720_s18 }
  0x1f   : > { %2188 = sst [smem:[#allocation21_spill]] %s2232_s12  ;;  %p1912_p7 = por %p1903_p6, %p63_p5 }
  0x20   : > { %s45_s24 = ssub.s32 %s1752_s26, %s2232_s12  ;;  %p297_p9 = scmp.eq.s32.totalorder %s1088_s28, 5 }
  0x21   : > { %s47_s20 = sor.u32 %s46_s14, %s45_s24  ;;  %p284_p10 = scmp.eq.s32.totalorder %s45_s24, 0 }
  0x22   : > { %p48_p11 = scmp.eq.s32.totalorder %s47_s20, 0  ;;  %p1920_p12 = por %p297_p9, %p296_p8 }
  0x23   : > { %s1925_s8 = scalar_select %p284_p10, %s1724_s19, %s286_s11  }
  0x24   : > { %s2190_s10 = scalar_select %p1920_p12, 1, 0 }
  0x25   : > { %2192 = sst [smem:[#allocation23_spill]] %s1925_s8  ;;  %p302_p13 = scmp.ne.s32.totalorder %s1720_s18, %s1716_s17 }
  0x26   : > { %2191 = sst [smem:[#allocation22_spill]] %s2190_s10  ;;  %p303_p0 = scmp.eq.s32.totalorder %s1089_s29, 5 }
  0x27   : > { %s1928_s6 = scalar_select %p48_p11, %s1736_s22, %s50_s13  }
  0x28   : > { %p1090_p1 = scmp.ge.s32.totalorder %s1756_s27, 1  ;;  %p310_p2 = scmp.lt.s32.totalorder %s1756_s27, 7 }
  0x29   : > { %2193 = sst [smem:[#allocation24_spill]] %s1928_s6  ;;  %p1934_p4 = por %p303_p0, %p302_p13 }
  0x2a   : > { %p1938_p5 = pnand %p1090_p1, %p310_p2  ;;  %s2197_s1 = sld [smem:[#allocation26_spill]] }
  0x2b   : > { %s2194_s4 = scalar_select %p1934_p4, 1, 0 }
  0x2c   : > { %p1312_p8 = pneg %p1938_p5  ;;  %s1758_s13 = smov [#allocation6]  }
  0x2d   : > { %2195 = sst [smem:[#allocation25_spill]] %s2194_s4  ;;  %s323_s29 = sshll.u32 %s1758_s13, 4  ;;  %s324_s29 = int_to_ptr.vmem [resolvable:$true] %s323_s29 }
  0x2e   : > { %p1949_p9 = pnand %p1312_p8, %p1903_p6  ;;  %s2199_s7 = sld [smem:[#allocation30_spill]] }
  0x2f   : > { %s1759_s28 = smov 64   ;;  %s1760_s14 = smov 4  }
  0x30   : > { %s321_s11 = sshll.u32 %s2197_s1, 4  ;;  %s1761_s13 = smov [#allocation9]   ;;  %s322_s11 = int_to_ptr.hbm [resolvable:$true] %s321_s11 }
  0x31   : > { %1315 = dma.hbm_to_vmem [thread:$0]  (!%p1949_p9), %s322_s11, 3072, %s324_s29, [#allocation7], %s1759_s28, %s1759_s28, %s1760_s14  }
  0x32   : > { %s363_s1 = sshll.u32 %s1761_s13, 4  ;;  %s344_s17 = sshll.u32 %s2159_s5, 4  ;;  %s364_s1 = int_to_ptr.vmem [resolvable:$true] %s363_s1  ;;  %s345_s17 = int_to_ptr.hbm [resolvable:$true] %s344_s17 }
  0x33   : > { %s1762_s10 = smov [#allocation8]   ;;  %s1763_s11 = smov [#allocation11]  }
  0x34   : > { %s361_s8 = sshll.u32 %s2199_s7, 4  ;;  %s378_s7 = sshll.u32 %s2163_s9, 4  ;;  %s362_s8 = int_to_ptr.hbm [resolvable:$true] %s361_s8  ;;  %s379_s7 = int_to_ptr.hbm [resolvable:$true] %s378_s7 }
  0x35   : > { %1321 = dma.hbm_to_vmem [thread:$0]  (!%p1949_p9), %s362_s8, 1024, %s364_s1, [#allocation10], %s1759_s28, %s1759_s28, %s1760_s14  }
  0x36   : > { %s346_s3 = sshll.u32 %s1762_s10, 4  ;;  %s380_s29 = sshll.u32 %s1763_s11, 4  ;;  %s347_s3 = int_to_ptr.vmem [resolvable:$true] %s346_s3  ;;  %s381_s29 = int_to_ptr.vmem [resolvable:$true] %s380_s29 }
  0x37   : > { %1318 = dma.hbm_to_vmem [thread:$0]  (!%p1949_p9), %s345_s17, 1024, %s347_s3, [#allocation7], %s1759_s28, %s1759_s28, %s1760_s14  }
  0x38   : > { %1324 = dma.hbm_to_vmem [thread:$0]  (!%p1949_p9), %s379_s7, 1024, %s381_s29, [#allocation10], %s1759_s28, %s1759_s28, %s1760_s14  }
  0x39   : > { %p1095_p10 = scmp.ge.s32.totalorder %s1756_s27, 6 }
  0x3b   : > { %393 = sbr.rel (%p1095_p10) target bundleno = 104 (0x68), region = 56 }
  0x40   : > { %396 = sbr.rel (!%p1898_p3) target bundleno = 104 (0x68), region = 60  ;;  %s397_s1 = sand.u32 (%p1898_p3), 1, %s1736_s22  }
  0x41   : > { %s1097_s4 = sshll.u32 (%p1898_p3), %s1752_s26, 1  ;;  %s1096_s8 = sshll.u32 (%p1898_p3), %s397_s1, 4 }
  0x42   : > { %s403_s10 = ssub.s32 (%p1898_p3), 3, %s1097_s4  ;;  %s1978_s7 = scalar_lea.sflag (%p1898_p3), [#allocation4], %s397_s1 }
  0x43   : > { %p404_p11 = scmp.lt.s32.totalorder (%p1898_p3), %s403_s10, 2  ;;  %s401_s20 = scalar_lea.vmem (%p1898_p3), [#allocation3], %s1096_s8 }
  0x45   : > { %s2234_s10 = smov (!%p404_p11, %s403_s10), 2 }
  0x46   : > { %s1098_s3 = sshll.u32 %s2234_s10, 3 }
  0x47   : > { %s407_s17 = ssub.s32 16, %s1098_s3 }
  0x48   : > { %s408_s19 = sshll.u32 %s407_s17, 4 }
  0x49   : > { %409 = vsyncadd %s1978_s7, %s408_s19  ;;  %p1981_p3 = scmp.ne.s32.totalorder %s1098_s3, 0  ;;  %s1293_s28 = smul.u32 6, %s1752_s26 }
  0x4a   : > { %s1986_s14 = sshll.u32 %s401_s20, 4  ;;  %s1103_s13 = sshll.u32 %s2234_s10, 7  ;;  %s419_s14 = int_to_ptr.vmem [resolvable:$true] %s1986_s14 }
  0x4b   : > { %s412_s6 = sadd.s32 %s1748_s25, %s1293_s28  ;;  %s1578_s3 = sshrl.u32 %s1103_s13, 4 }
  0x4c   : > { %s1101_s12 = sshll.u32 %s412_s6, 3  ;;  %s1587_s28 = scalar_lea.hbm %s2154_s0, 72 }
  0x4d   : > { %s414_s1 = scalar_lea.hbm %s2154_s0, %s1101_s12 }
  0x4e   : > { %s416_s4 = sshll.u32 %s414_s1, 4  ;;  %s1994_s4 = int_to_ptr.hbm [resolvable:$true] %s416_s4 }
  0x4f   : > { %s1576_s8 = sshra.s32 %s1994_s4, 4  ;;  %s1577_s8 = int_to_ptr.hbm [resolvable:$true] %s1576_s8 }
  0x50   : > { %s1583_s17 = scalar_lea.hbm %s1577_s8, %s1578_s3 }
  0x51   : > { %p1584_p13 = scmp.ne.s32.totalorder %s1577_s8, %s1583_s17  ;;  %p1589_p2 = scmp.lt.s32.totalorder %s1587_s28, %s1583_s17 }
  0x53   : > { %p1585_p0 = pnand %p1584_p13, %p1981_p3 }
  0x55   : > { %p1586_p1 = pneg %p1585_p0 }
  0x57   : > { %p1591_p8 = pnand %p1589_p2, %p1586_p1 }
  0x59   : > { %1594 = shalt.err (!%p1591_p8)
}
  0x5a   : > { %s1595_s6 = sshra.s32 %s419_s14, 4  ;;  %s1764_s11 = smov [#allocation3]   ;;  %s1596_s6 = int_to_ptr.vmem [resolvable:$true] %s1595_s6 }
  0x5b   : > { %s1602_s12 = scalar_lea.vmem %s1596_s6, %s1578_s3  ;;  %s1606_s29 = scalar_lea.vmem %s1764_s11, 32 }
  0x5c   : > { %p1603_p9 = scmp.ne.s32.totalorder %s1596_s6, %s1602_s12  ;;  %p1608_p13 = scmp.lt.s32.totalorder %s1606_s29, %s1602_s12 }
  0x5e   : > { %p1604_p10 = pnand %p1603_p9, %p1981_p3 }
  0x60   : > { %p1605_p11 = pneg %p1604_p10 }
  0x62   : > { %p1610_p0 = pnand %p1608_p13, %p1605_p11 }
  0x64   : > { %1613 = shalt.err (!%p1610_p0)
}
  0x65   : > { %s1765_s1 = smov 384   ;;  %s1766_s8 = smov 128  }
  0x66   : > { %s1767_s17 = smov 8  }
  0x67   : > { %424 = dma.hbm_to_vmem [thread:$0]  (%p1981_p3), %s1994_s4, %s1103_s13, %s419_s14, %s1978_s7, %s1765_s1, %s1766_s8, %s1767_s17  }
  0x68 PF: > { %430 = sbr.rel (%p1938_p5) target bundleno = 1064 (0x428), region = 64  ;;  %s432_s3 = sand.u32 (!%p1938_p5), 1, %s1732_s21  }
  0x69   : > { %s2019_s19 = sshll.u32 (!%p1938_p5), %s432_s3, 4  ;;  %s433_s20 = scalar_lea.sflag (!%p1938_p5), [#allocation4], %s432_s3 }
  0x6a   : > { %s436_s28 = scalar_lea.vmem (!%p1938_p5), [#allocation3], %s2019_s19 }
  0x6d   : > { %1699 = dma.done.wait (%p1912_p7), %s433_s20, 256  }
  0x6e   : > { %1701 = vsyncadd (%p1912_p7), %s433_s20, 4294967040 }
  0x6f   : > { %1703 = dma.done.wait (%p1903_p6), [#allocation7], 4096  }
  0x70   : > { %1705 = vsyncadd (%p1903_p6), [#allocation7], 4294963200 }
  0x71   : > { %1707 = dma.done.wait (%p1903_p6), [#allocation10], 2048  }
  0x72   : > { %1709 = vsyncadd (%p1903_p6), [#allocation10], 4294965248  ;;  %s493_s24 = sand.u32 1, %s1720_s18   ;;  %s1111_s10 = sshll.u32 %s1740_s23, 7  ;;  %v508_v6 = vlaneseq  ;;  %v506_v11 = vld [vmem:[%s436_s28] sm:$0xff]  ;;  %v507_v12 = vld [vmem:[%s436_s28 + $0x8] sm:$0xff] }
  0x73   : > { %s2038_s30 = sshll.u32 %s493_s24, 3  ;;  %s517_s7 = sshra.s32 %s1111_s10, 3  ;;  %v1146_v13 = vpack.c.bf16 %v507_v12, %v506_v11 }
  0x74   : > { %s1112_s15 = sshll.u32 %s517_s7, 2  ;;  %s511_s16 = ssub.s32 320, %s1111_s10  ;;  %v509_v8 = vand.u32 127, %v508_v6 }
  0x75   : > { %s520_s14 = scalar_lea.vmem [#allocation6], %s1112_s15  ;;  %v512_v9 = vstv %s511_s16  ;;  %s495_s13 = scalar_lea.vmem [#allocation12], %s2038_s30 }
  0x76   : > { %v1262_v0 = vld [vmem:[%s520_s14 + $0x38] sm:$0xff]  ;;  %v1261_v1 = vld [vmem:[%s520_s14 + $0x30] sm:$0xff]  ;;  %v1260_v2 = vld [vmem:[%s520_s14 + $0x28] sm:$0xff]  ;;  %vm513_vm0 = vcmp.lt.s32.totalorder %v509_v8, %v512_v9  ;;  %p1148_p6 = scmp.ne.s32.totalorder %s1740_s23, 0 }
  0x77   : > { %585 = vmatpush.bf16.msra.mxu0 %v1262_v0  ;;  %v1259_v3 = vld [vmem:[%s520_s14 + $0x20] sm:$0xff]  ;;  %v1258_v4 = vld [vmem:[%s520_s14 + $0x18] sm:$0xff]  ;;  %v1257_v5 = vld [vmem:[%s520_s14 + $0x10] sm:$0xff] }
  0x78   : > { %v1256_v7 = vld [vmem:[%s520_s14 + $0x8] sm:$0xff]  ;;  %v1255_v10 = vld [vmem:[%s520_s14] sm:$0xff]  ;;  %vm1145_vm1 = vmpackc.low %vm513_vm0, %vm513_vm0 }
  0x7b   : > { %586 = vmatpush.bf16.msra.mxu0 %v1261_v1 }
  0x7f   : > { %587 = vmatpush.bf16.msra.mxu0 %v1260_v2 }
  0x83   : > { %588 = vmatpush.bf16.msra.mxu0 %v1259_v3 }
  0x87   : > { %589 = vmatpush.bf16.msra.mxu0 %v1258_v4 }
  0x8b   : > { %590 = vmatpush.bf16.msra.mxu0 %v1257_v5 }
  0x8f   : > { %591 = vmatpush.bf16.msra.mxu0 %v1256_v7 }
  0x93   : > { %592 = vmatpush.bf16.msra.mxu0 %v1255_v10 }
  0x96   : > { %1147 = vmatmul.msk.bf16.vlgmr.msra.gmra.mxu0 %vm1145_vm1, %v1146_v13 }
 0x113   : > { %v594_v14 = vpop.f32.mrf.mxu0 }
 0x117   : > { %602 = sbr.rel (%p1148_p6) target bundleno = 287 (0x11f), region = 88 }
 0x11b   : > { %v596_v15 = vpop.f32.mrf.mxu0 }
 0x11c   : > { %v1768_v16 = vmov 0.0  }
 0x11d   : > { %603 = vst [vmem:[#allocation2] sm:$0xff] %v1768_v16 }
 0x11e   : > { %604 = vst [vmem:[#allocation2 + $0x8] sm:$0xff] %v1768_v16 }
 0x11f PF: > { %p1149_p7 = scmp.ne.s32.totalorder %s1740_s23, 2 }
 0x120   : > { %s2201_s11 = sld [smem:[#allocation27_spill]] (!%p1149_p7) }
 0x121   : > { %s2202_s8 = sld [smem:[#allocation28_spill]] (!%p1149_p7) }
 0x122   : > { %s2203_s19 = sld [smem:[#allocation29_spill]] (!%p1149_p7) }
 0x123   : > { %s2204_s10 = sld [smem:[#allocation31_spill]] (!%p1149_p7) }
 0x124   : > { %v605_v17 = vld [vmem:[#allocation2] sm:$0xff]  ;;  %614 = sbr.rel (%p1149_p7) target bundleno = 1021 (0x3fd), region = 92  ;;  %s2205_s14 = sld [smem:[#allocation32_spill]] (!%p1149_p7) }
 0x125   : > { %v606_v18 = vld [vmem:[#allocation2 + $0x8] sm:$0xff]  ;;  %v607_v19 = vadd.f32 %v605_v17, %v594_v14 }
 0x126   : > { %v608_v20 = vadd.f32 %v606_v18, %v596_v15 }
 0x127   : > { %609 = vst [vmem:[#allocation2] sm:$0xff] %v607_v19 }
 0x128   : > { %610 = vst [vmem:[#allocation2 + $0x8] sm:$0xff] %v608_v20 }
 0x129   : > { %v1438_v22 = vld [vmem:[%s2156_s2] ss:$0 sm:$0xff]  ;;  %vm631_vm2 = vcmp.lt.s32.totalorder %v509_v8, 48  ;;  %v1270_v36 = vld [vmem:[#allocation8 + $0x38] sm:$0xff]  ;;  %v1268_v38 = vld [vmem:[#allocation8 + $0x28] sm:$0xff] }
 0x12a   : > { %749 = vmatpush.bf16.msra.mxu0 %v1270_v36  ;;  %v1269_v37 = vld [vmem:[#allocation8 + $0x30] sm:$0xff]  ;;  %v1267_v39 = vld [vmem:[#allocation8 + $0x20] sm:$0xff]  ;;  %v1266_v40 = vld [vmem:[#allocation8 + $0x18] sm:$0xff] }
 0x12b   : > { %v1265_v41 = vld [vmem:[#allocation8 + $0x10] sm:$0xff]  ;;  %v1264_v45 = vld [vmem:[#allocation8 + $0x8] sm:$0xff]  ;;  %v1263_v46 = vld [vmem:[#allocation8] sm:$0xff] }
 0x12c   : > { %v1278_v53 = vld [vmem:[#allocation9 + $0x38] sm:$0xff]  ;;  %v1277_v55 = vld [vmem:[#allocation9 + $0x30] sm:$0xff]  ;;  %v1276_v60 = vld [vmem:[#allocation9 + $0x28] sm:$0xff] }
 0x12d   : > { %834 = vmatpush.bf16.msra.mxu1 %v1278_v53  ;;  %v1439_v1 = vld [vmem:[%s2201_s11] ss:$0 sm:$0xff]  ;;  %v1275_v2 = vld [vmem:[#allocation9 + $0x20] sm:$0xff]  ;;  %v1274_v15 = vld [vmem:[#allocation9 + $0x18] sm:$0xff] }
 0x12e   : > { %v615_v21 = vld [vmem:[#allocation2] sm:$0xff]  ;;  %750 = vmatpush.bf16.msra.mxu0 %v1269_v37  ;;  %v1272_v17 = vld [vmem:[#allocation9 + $0x8] sm:$0xff]  ;;  %v1271_v18 = vld [vmem:[#allocation9] sm:$0xff] }
 0x12f   : > { %v621_v23 = vadd.f32 %v1438_v22, %v615_v21  ;;  %v616_v24 = vld [vmem:[#allocation2 + $0x8] sm:$0xff]  ;;  %v1440_v6 = vld [vmem:[%s2202_s8] ss:$0 sm:$0xff]  ;;  %v1284_v21 = vld [vmem:[#allocation11 + $0x28] sm:$0xff] }
 0x130   : > { %v622_v25 = vadd.f32 %v1438_v22, %v616_v24  ;;  %v1273_v16 = vld [vmem:[#allocation9 + $0x10] sm:$0xff]  ;;  %v1286_v19 = vld [vmem:[#allocation11 + $0x38] sm:$0xff]  ;;  %v1283_v22 = vld [vmem:[#allocation11 + $0x20] sm:$0xff] }
 0x131   : > { %623 = vadd.xlane.f32.xlu0 %v621_v23  ;;  %835 = vmatpush.bf16.msra.mxu1 %v1277_v55  ;;  %v1285_v20 = vld [vmem:[#allocation11 + $0x30] sm:$0xff] }
 0x132   : > { %751 = vmatpush.bf16.msra.mxu0 %v1268_v38  ;;  %919 = vmatpush.bf16.msra.mxu2 %v1286_v19  ;;  %v1441_v24 = vld [vmem:[%s2203_s19] ss:$0 sm:$0xff] }
 0x133   : > { %v1442_v36 = vld [vmem:[%s2204_s10] ss:$0 sm:$0xff] }
 0x135   : > { %836 = vmatpush.bf16.msra.mxu1 %v1276_v60 }
 0x136   : > { %752 = vmatpush.bf16.msra.mxu0 %v1267_v39  ;;  %920 = vmatpush.bf16.msra.mxu2 %v1285_v20 }
 0x139   : > { %625 = vadd.xlane.f32.xlu0 %v622_v25  ;;  %837 = vmatpush.bf16.msra.mxu1 %v1275_v2 }
 0x13a   : > { %753 = vmatpush.bf16.msra.mxu0 %v1266_v40  ;;  %921 = vmatpush.bf16.msra.mxu2 %v1284_v21 }
 0x13d   : > { %838 = vmatpush.bf16.msra.mxu1 %v1274_v15 }
 0x13e   : > { %754 = vmatpush.bf16.msra.mxu0 %v1265_v41  ;;  %922 = vmatpush.bf16.msra.mxu2 %v1283_v22 }
 0x141   : > { %839 = vmatpush.bf16.msra.mxu1 %v1273_v16 }
 0x142   : > { %755 = vmatpush.bf16.msra.mxu0 %v1264_v45 }
 0x145   : > { %840 = vmatpush.bf16.msra.mxu1 %v1272_v17 }
 0x146   : > { %756 = vmatpush.bf16.msra.mxu0 %v1263_v46 }
 0x149   : > { %841 = vmatpush.bf16.msra.mxu1 %v1271_v18 }
 0x1a4   : > { %v624_v26 = vpop.xlane.xlu0 %623 }
 0x1a5   : > { %v627_v27 = vmul.f32 0.020833334, %v624_v26 }
 0x1a7   : > { %v629_v28 = vsub.f32 %v621_v23, %v627_v27 }
 0x1a9   : > { %v632_v29 = vsel %vm631_vm2, %v629_v28, 0.0 }
 0x1aa   : > { %v634_v30 = vmul.f32 %v632_v29, %v632_v29 }
 0x1ac   : > { %636 = vadd.xlane.f32.xlu1 %v634_v30  ;;  %v626_v31 = vpop.xlane.xlu0 %625 }
 0x1ad   : > { %v628_v32 = vmul.f32 0.020833334, %v626_v31  ;;  %v1282_v31 = vld [vmem:[#allocation11 + $0x18] sm:$0xff] }
 0x1ae   : > { %923 = vmatpush.bf16.msra.mxu2 %v1282_v31 }
 0x1af   : > { %v630_v33 = vsub.f32 %v622_v25, %v628_v32  ;;  %v1281_v32 = vld [vmem:[#allocation11 + $0x10] sm:$0xff] }
 0x1b1   : > { %v633_v34 = vsel %vm631_vm2, %v630_v33, 0.0  ;;  %v1280_v33 = vld [vmem:[#allocation11 + $0x8] sm:$0xff] }
 0x1b2   : > { %v635_v35 = vmul.f32 %v633_v34, %v633_v34  ;;  %924 = vmatpush.bf16.msra.mxu2 %v1281_v32 }
 0x1b4   : > { %638 = vadd.xlane.f32.xlu1 %v635_v35 }
 0x1b6   : > { %925 = vmatpush.bf16.msra.mxu2 %v1280_v33 }
 0x21f   : > { %v637_v42 = vpop.xlane.xlu1 %636 }
 0x220   : > { %v640_v43 = vmul.f32 0.020833334, %v637_v42 }
 0x222   : > { %v642_v44 = vadd.f32 1e-05, %v640_v43 }
 0x224   : > { %1444 = vrsqrt.f32 %v642_v44  ;;  %vm650_vm4 = vweird.f32 %v642_v44 }
 0x227   : > { %v639_v47 = vpop.xlane.xlu1 %638 }
 0x228   : > { %v641_v48 = vmul.f32 0.020833334, %v639_v47 }
 0x22a   : > { %v1445_v49 = vpop.eup %1444  ;;  %v643_v50 = vadd.f32 1e-05, %v641_v48 }
 0x22b   : > { %v645_v51 = vmul.f32 %v1445_v49, %v642_v44  ;;  %vm651_vm3 = vweird.f32 %v1445_v49  ;;  %v1443_v44 = vld [vmem:[%s2205_s14] ss:$0 sm:$0xff] }
 0x22c   : > { %1446 = vrsqrt.f32 %v643_v50  ;;  %vm652_vm5 = vmor %vm650_vm4, %vm651_vm3  ;;  %vm660_vm7 = vweird.f32 %v643_v50 }
 0x22d   : > { %v646_v52 = vmul.f32 %v1445_v49, %v645_v51 }
 0x22f   : > { %v647_v54 = vmul.f32 0.5, %v646_v52 }
 0x231   : > { %v648_v56 = vsub.f32 1.5, %v647_v54 }
 0x232   : > { %v1447_v57 = vpop.eup %1446 }
 0x233   : > { %v649_v58 = vmul.f32 %v1445_v49, %v648_v56  ;;  %v655_v59 = vmul.f32 %v1447_v57, %v643_v50  ;;  %vm661_vm6 = vweird.f32 %v1447_v57 }
 0x234   : > { %vm662_vm8 = vmor %vm660_vm7, %vm661_vm6 }
 0x235   : > { %v653_v61 = vsel %vm652_vm5, %v1445_v49, %v649_v58  ;;  %v656_v62 = vmul.f32 %v1447_v57, %v655_v59 }
 0x236   : > { %v664_v63 = vmul.f32 %v653_v61, %v632_v29 }
 0x237   : > { %v657_v0 = vmul.f32 0.5, %v656_v62 }
 0x238   : > { %v670_v5 = vmul.f32 %v1439_v1, %v664_v63 }
 0x239   : > { %v658_v3 = vsub.f32 1.5, %v657_v0 }
 0x23a   : > { %v676_v9 = vadd.f32 %v1440_v6, %v670_v5 }
 0x23b   : > { %v659_v4 = vmul.f32 %v1447_v57, %v658_v3 }
 0x23c   : > { %1448 = vtanh.f32 %v676_v9 }
 0x23d   : > { %v663_v7 = vsel %vm662_vm8, %v1447_v57, %v659_v4 }
 0x23e   : > { %v665_v8 = vmul.f32 %v663_v7, %v633_v34  ;;  %v1279_v34 = vld [vmem:[#allocation11] sm:$0xff] }
 0x23f   : > { %926 = vmatpush.bf16.msra.mxu2 %v1279_v34 }
 0x240   : > { %v671_v10 = vmul.f32 %v1439_v1, %v665_v8 }
 0x242   : > { %v677_v11 = vadd.f32 %v1440_v6, %v671_v10  ;;  %v1449_v12 = vpop.eup %1448 }
 0x244   : > { %1450 = vtanh.f32 %v677_v11 }
 0x24a   : > { %v1451_v13 = vpop.eup %1450 }
 0x24b   : > { %v680_v14 = vpack.c.bf16 %v1451_v13, %v1449_v12 }
 0x24d   : > { %757 = vmatmul.bf16.vlgmr.msra.gmra.mxu0 %v680_v14 }
 0x2ca   : > { %v758_v23 = vpop.f32.mrf.mxu0 }
 0x2cb   : > { %v759_v25 = vadd.f32 %v1441_v24, %v758_v23 }
 0x2cd   : > { %v763_v28 = vmax.f32 %v759_v25, 0.0 }
 0x2d2   : > { %v760_v26 = vpop.f32.mrf.mxu0 }
 0x2d3   : > { %v761_v27 = vadd.f32 %v1441_v24, %v760_v26 }
 0x2d5   : > { %v764_v29 = vmax.f32 %v761_v27, 0.0 }
 0x2d7   : > { %v765_v30 = vpack.c.bf16 %v764_v29, %v763_v28 }
 0x2d9   : > { %842 = vmatmul.bf16.vlgmr.msra.gmra.mxu1 %v765_v30 }
 0x356   : > { %v843_v35 = vpop.f32.mrf.mxu1 }
 0x357   : > { %v844_v37 = vadd.f32 %v1442_v36, %v843_v35 }
 0x359   : > { %v848_v40 = vmax.f32 %v844_v37, 0.0 }
 0x35e   : > { %v845_v38 = vpop.f32.mrf.mxu1 }
 0x35f   : > { %v846_v39 = vadd.f32 %v1442_v36, %v845_v38 }
 0x361   : > { %v849_v41 = vmax.f32 %v846_v39, 0.0 }
 0x363   : > { %v850_v42 = vpack.c.bf16 %v849_v41, %v848_v40 }
 0x365   : > { %927 = vmatmul.bf16.vlgmr.msra.gmra.mxu2 %v850_v42 }
 0x3e8   : > { %v928_v43 = vpop.f32.mrf.mxu2 }
 0x3e9   : > { %v929_v45 = vadd.f32 %v1443_v44, %v928_v43 }
 0x3eb   : > { %1452 = vtanh.f32 %v929_v45 }
 0x3f0   : > { %v930_v46 = vpop.f32.mrf.mxu2 }
 0x3f1   : > { %v931_v47 = vadd.f32 %v1443_v44, %v930_v46  ;;  %v1453_v48 = vpop.eup %1452 }
 0x3f3   : > { %1454 = vtanh.f32 %v931_v47 }
 0x3f9   : > { %v1455_v49 = vpop.eup %1454 }
 0x3fa   : > { %v1291_v50 = vpack.c.bf16 %v1455_v49, %v1453_v48 }
 0x3fc   : > { %1292 = vst [vmem:[%s495_s13] sm:$0xff] %v1291_v50  }
 0x3fd PF: > { %s2069_s16 = scalar_lea.sflag [#allocation5], %s493_s24  ;;  %946 = sbr.rel (!%p1920_p12) target bundleno = 1064 (0x428), region = 96 }
 0x3fe   : > { %s2207_s6 = sld [smem:[#allocation19_spill]] (%p1920_p12) }
 0x404   : > { %s1247_s23 = sshll.u32 %s2207_s6, 1 }
 0x405   : > { %s948_s12 = ssub.s32 3, %s1247_s23 }
 0x406   : > { %p949_p5 = scmp.lt.s32.totalorder %s948_s12, 2 }
 0x408   : > { %s2236_s12 = smov (!%p949_p5, %s948_s12), 2 }
 0x409   : > { %s1248_s11 = sshll.u32 %s2236_s12, 2 }
 0x40a   : > { %s952_s29 = ssub.s32 8, %s1248_s11 }
 0x40b   : > { %s953_s1 = sshll.u32 %s952_s29, 4 }
 0x40c   : > { %954 = vsyncadd %s2069_s16, %s953_s1  ;;  %p2078_p3 = scmp.ne.s32.totalorder %s1248_s11, 0  ;;  %s1287_s8 = sshll.u32 %s2207_s6, 3 }
 0x40d   : > { %s2209_s19 = sld [smem:[#allocation33_spill]]  ;;  %s2088_s10 = sshll.u32 %s495_s13, 4  ;;  %s960_s10 = int_to_ptr.vmem [resolvable:$true] %s2088_s10 }
 0x40e   : > { %s1252_s15 = sshll.u32 %s2236_s12, 6  ;;  %s1615_s14 = sshra.s32 %s960_s10, 4  ;;  %s1616_s14 = int_to_ptr.vmem [resolvable:$true] %s1615_s14 }
 0x40f   : > { %s1617_s4 = sshrl.u32 %s1252_s15, 4  ;;  %s1769_s30 = smov [#allocation12]  }
 0x410   : > { %s1622_s6 = scalar_lea.vmem %s1616_s14, %s1617_s4  ;;  %s1626_s13 = scalar_lea.vmem %s1769_s30, 16 }
 0x411   : > { %p1623_p12 = scmp.ne.s32.totalorder %s1616_s14, %s1622_s6  ;;  %p1628_p8 = scmp.lt.s32.totalorder %s1626_s13, %s1622_s6 }
 0x413   : > { %s2210_s28 = smov %s2209_s19  ;;  %s957_s20 = scalar_lea.hbm %s2209_s19, %s1287_s8 }
 0x414   : > { %s961_s7 = sshll.u32 %s957_s20, 4  ;;  %p1624_p1 = pnand %p1623_p12, %p2078_p3  ;;  %s2091_s7 = int_to_ptr.hbm [resolvable:$true] %s961_s7 }
 0x416   : > { %p1625_p2 = pneg %p1624_p1 }
 0x418   : > { %p1630_p9 = pnand %p1628_p8, %p1625_p2 }
 0x41a   : > { %1633 = shalt.err (!%p1630_p9)
}
 0x41b   : > { %s1634_s23 = sshra.s32 %s2091_s7, 4  ;;  %s1645_s8 = scalar_lea.hbm %s2210_s28, 12  ;;  %s1635_s23 = int_to_ptr.hbm [resolvable:$true] %s1634_s23 }
 0x41c   : > { %s1641_s11 = scalar_lea.hbm %s1635_s23, %s1617_s4  ;;  %p1646_p0 = scmp.lt.s32.totalorder %s1635_s23, %s2210_s28 }
 0x41d   : > { %p1642_p10 = scmp.ne.s32.totalorder %s1635_s23, %s1641_s11  ;;  %p1647_p6 = scmp.lt.s32.totalorder %s1645_s8, %s1641_s11 }
 0x41f   : > { %p1643_p11 = pnand %p1642_p10, %p2078_p3  ;;  %p1648_p7 = por %p1647_p6, %p1646_p0 }
 0x421   : > { %p1644_p13 = pneg %p1643_p11 }
 0x423   : > { %p1649_p5 = pnand %p1648_p7, %p1644_p13 }
 0x425   : > { %1652 = shalt.err (!%p1649_p5)
}
 0x426   : > { %s1770_s19 = smov 64   ;;  %s1771_s20 = smov 4  }
 0x427   : > { %967 = dma.vmem_to_hbm [thread:$0]  (%p2078_p3), %s960_s10, %s1252_s15, %s2091_s7, %s2069_s16, %s1770_s19, %s1770_s19, %s1771_s20  }
 0x428 PF: > { %s2211_s14 = sld [smem:[#allocation17_spill]]  ;;  %p1337_p12 = scmp.ge.s32.totalorder %s1756_s27, 2 }
 0x42a   : > { %p1326_p1 = pnand %p1337_p12, %p1934_p4 }
 0x42c   : > { %p1327_p2 = pneg %p1326_p1 }
 0x42e   : > { %s976_s6 = sand.u32 1, %s2211_s14  }
 0x42f   : > { %s977_s30 = scalar_lea.sflag [#allocation5], %s976_s6 }
 0x430   : > { %1711 = dma.done.wait (%p1327_p2), %s977_s30, 128  }
 0x431   : > { %1713 = vsyncadd (%p1327_p2), %s977_s30, 4294967168  ;;  %s29_s27 = sadd.s32 1, %s1756_s27   ;;  %s2213_s12 = sld [smem:[#allocation18_spill]] }
 0x432   : > { %p26_p8 = scmp.ge.s32.totalorder %s29_s27, 8   ;;  %s2214_s19 = sld [smem:[#allocation23_spill]] }
 0x433   : > { %s2215_s16 = sld [smem:[#allocation24_spill]]  ;;  %s2218_s17 = smov %s1720_s18 }
 0x434   : > { %s2216_s10 = sld [smem:[#allocation20_spill]]  ;;  %s2220_s20 = smov %s1732_s21 }
 0x435   : > { %s2217_s7 = sld [smem:[#allocation21_spill]]  ;;  %s2221_s21 = smov %s1736_s22 }
 0x436   : > { %s2223_s23 = smov %s1748_s25  ;;  %s2224_s24 = smov %s1752_s26 }
 0x437   : > { %s2219_s18 = smov %s2213_s12  ;;  %28 = sbr.rel (!%p26_p8) target bundleno = 20 (0x14), region = 134 }
 0x439   : > { %s2222_s22 = smov %s2215_s16 }
 0x43a   : > { %s2225_s25 = smov %s2216_s10 }
 0x43b   : > { %s2226_s26 = smov %s2217_s7 }
 0x43c   :  { %983 = vsyncpa [#allocation4], 1 }
 0x43d   :  { %985 = vsyncpa [#allocation4 + $0x1], 1 }
 0x43e   :  { %986 = vsyncpa [#allocation7], 1 }
 0x43f   :  { %987 = vsyncpa [#allocation10], 1 }
 0x440   :  { %988 = vsyncpa [#allocation5], 1 }
 0x441   :  { %990 = vsyncpa [#allocation5 + $0x1], 1 }

</bundles_post_ra>
